<compile_context>
chip_gen: v5e
topology: v5e:2x2
jax: 0.10.0
libtpu: 0.0.40
codegen_flags: <defaults>
</compile_context>

<pallas_src>
import functools
import math

import jax
import jax.numpy as jnp
from jax.experimental import pallas as pl
from jax.experimental.pallas import tpu as pltpu

MIN_LOG_STD = -20.0
MAX_LOG_STD = 2.0
_F32_BIG = 3.0e38          # "no cap" value for mu / pad lanes

LANE = 128                 # vreg lane width
SUBLANE = 8                # vreg sublane count (f32)
TB_MAX = 1024              # max batch tile (multiple of 8)
_SINGLE_BUF_WEIGHT_BYTES = 8 << 20   # single-buffer resident weights above this


def _round_up(x, m):
    return ((x + m - 1) // m) * m


def actor_kernel(x_ref, w1_ref, b1_ref, w2_ref, b2_ref, w3_ref, b3_ref,
                 cap_ref, out_ref):
    # Layer 1: bf16 MXU matmul, f32 accumulate, f32 bias + ReLU.
    h = jnp.dot(x_ref[...].astype(jnp.bfloat16), w1_ref[...],
                preferred_element_type=jnp.float32)
    h = jnp.maximum(h + b1_ref[...], 0.0)
    # Layer 2.
    h = jnp.dot(h.astype(jnp.bfloat16), w2_ref[...],
                preferred_element_type=jnp.float32)
    h = jnp.maximum(h + b2_ref[...], 0.0)
    # Layer 3 (output, width round_up(2*action_dim, 128)). The PyTorch reference
    # applies the activation to the last layer too, so out >= 0 and the -20
    # lower clamp can never fire; a per-lane min against the precomputed cap
    # vector (FMAX for mu/pad lanes, 2.0 for log_sigma lanes) is exact.
    out = jnp.dot(h.astype(jnp.bfloat16), w3_ref[...],
                  preferred_element_type=jnp.float32)
    out = jnp.maximum(out + b3_ref[...], 0.0)
    out_ref[...] = jnp.minimum(out, cap_ref[...])


def _nbytes(a):
    return a.size * jnp.dtype(a.dtype).itemsize


@functools.partial(jax.jit, static_argnums=(2,))
def actor_forward(x, padded_params, action_dim):
    """x: (B, input_dim) float32. padded_params: bf16 weights / f32 biases with
    output (N) dims and inter-layer K dims padded to 128, plus the per-lane
    clamp cap vector. Returns (mu, log_sigma), each (B, action_dim) float32."""
    w1, b1, w2, b2, w3, b3, cap = padded_params
    batch, in_dim = x.shape
    h1_pad, h2_pad = w1.shape[1], w2.shape[1]
    out_pad = w3.shape[1]

    # Shape validation (trace-time; shapes are static).
    if w1.shape[0] != in_dim:
        raise ValueError(f"w1 K dim {w1.shape[0]} != input_dim {in_dim}")
    if out_pad != _round_up(2 * action_dim, LANE):
        raise ValueError(
            f"w3 out-dim {out_pad} != round_up(2*action_dim={2*action_dim},128)")
    if w2.shape[0] != h1_pad or w3.shape[0] != h2_pad or cap.shape != (1, out_pad):
        raise ValueError("inter-layer padded widths are inconsistent")

    # Batch tiling: pad rows to a sublane multiple; whenever there is enough
    # work (>= 16 rows) use >= 2 tiles so the "parallel" batch axis can be
    # sharded across v7x's two TensorCores (no-op on single-TC v5e/v6e).
    b_pad = _round_up(max(batch, 1), SUBLANE)
    if b_pad > TB_MAX:
        tb = TB_MAX
    elif b_pad >= 2 * SUBLANE:
        tb = _round_up(b_pad // 2, SUBLANE)
    else:
        tb = b_pad
    b_pad = _round_up(b_pad, tb)
    num_tiles = b_pad // tb

    # Only the batch (row) dim is ever padded; feature dims of x are untouched.
    x_pad = x if b_pad == batch else jnp.pad(x, ((0, b_pad - batch), (0, 0)))

    weight_bytes = sum(_nbytes(a) for a in (w1, b1, w2, b2, w3, b3, cap))
    flops = 2 * b_pad * (in_dim * h1_pad + h1_pad * h2_pad + h2_pad * out_pad)
    bytes_accessed = _nbytes(x_pad) + 4 * b_pad * out_pad + weight_bytes

    # Explicit VMEM budget: double-buffered x/out streams, resident weights
    # (count them twice in case single-buffering is unavailable), and f32+bf16
    # temporaries for one tile, with headroom. Clamped to v7x's 64 MiB physical.
    stream_bytes = 2 * tb * in_dim * 4 + 2 * tb * out_pad * 4
    interm_bytes = tb * (in_dim + h1_pad + h2_pad + out_pad) * 6
    vmem_limit = int(1.5 * (2 * weight_bytes + stream_bytes + interm_bytes)) + (2 << 20)
    vmem_limit = min(max(vmem_limit, 16 << 20), 64 << 20)

    # Weights/biases/cap are grid-invariant (constant index_map -> VMEM
    # resident). Above a size threshold request single-buffering so the
    # default 2x residency does not eat v7x's 64 MiB VMEM.
    single_buffer = weight_bytes > _SINGLE_BUF_WEIGHT_BYTES

    def const_spec(arr):
        idx = lambda i: (0, 0)
        if single_buffer:
            try:
                return pl.BlockSpec(arr.shape, idx, pipeline_mode=pl.Buffered(1))
            except TypeError:
                pass
        return pl.BlockSpec(arr.shape, idx)

    fused = pl.pallas_call(
        actor_kernel,
        out_shape=jax.ShapeDtypeStruct((b_pad, out_pad), jnp.float32),
        grid=(num_tiles,),
        in_specs=[
            pl.BlockSpec((tb, in_dim), lambda i: (i, 0)),   # x: tiled over batch,
            const_spec(w1), const_spec(b1),                 # native feature width
            const_spec(w2), const_spec(b2),
            const_spec(w3), const_spec(b3),
            const_spec(cap),
        ],
        out_specs=pl.BlockSpec((tb, out_pad), lambda i: (i, 0)),
        compiler_params=pltpu.CompilerParams(
            dimension_semantics=("parallel",),
            vmem_limit_bytes=vmem_limit),
        cost_estimate=pl.CostEstimate(flops=flops, transcendentals=0,
                                      bytes_accessed=bytes_accessed),
    )(x_pad, w1, b1, w2, b2, w3, b3, cap)

    mu = fused[:batch, :action_dim]
    log_sigma = fused[:batch, action_dim:2 * action_dim]
    return mu, log_sigma


def init_actor_params(key, input_dim, hidden_sizes, action_dim):
    """PyTorch-style uniform init at logical sizes.
    Weights as (in, out) float32; biases as (1, out) float32."""
    layer_sizes = [input_dim] + list(hidden_sizes) + [2 * action_dim]
    params = []
    for fan_in, fan_out in zip(layer_sizes[:-1], layer_sizes[1:]):
        key, kw, kb = jax.random.split(key, 3)
        bound = 1.0 / math.sqrt(fan_in)
        w = jax.random.uniform(kw, (fan_in, fan_out), jnp.float32, -bound, bound)
        b = jax.random.uniform(kb, (1, fan_out), jnp.float32, -bound, bound)
        params.extend([w, b])
    return tuple(params)


def pad_actor_params(params, action_dim, weight_dtype=jnp.bfloat16):
    """Prepare kernel params: output (N) dims and inter-layer K dims are
    zero-padded to multiples of 128 (the first layer's K dim — the raw input
    width — is left untouched); weights are cast to `weight_dtype` (bf16 for
    native MXU throughput), biases stay f32. Also builds the (1, out_pad)
    per-lane clamp cap vector used in the kernel epilogue."""
    layers = list(zip(params[0::2], params[1::2]))
    padded = []
    prev_out_pad = None
    for li, (w, b) in enumerate(layers):
        fi, fo = w.shape
        fo_p = _round_up(fo, LANE)
        fi_p = fi if li == 0 else prev_out_pad
        wp = jnp.pad(w, ((0, fi_p - fi), (0, fo_p - fo))).astype(weight_dtype)
        bp = jnp.pad(b, ((0, 0), (0, fo_p - fo))).astype(jnp.float32)
        padded.extend([wp, bp])
        prev_out_pad = fo_p
    out_pad = prev_out_pad
    lane = jnp.arange(out_pad)
    cap = jnp.where((lane >= action_dim) & (lane < 2 * action_dim),
                    MAX_LOG_STD, _F32_BIG).astype(jnp.float32)[None, :]
    padded.append(cap)
    return tuple(padded)


def actor_forward_ref(x, params, action_dim, matmul_dtype=jnp.float32):
    """Pure-JAX reference on the UNPADDED params (mirrors the PyTorch forward).
    With matmul_dtype=bf16 it emulates the kernel's MXU numerics."""
    w1, b1, w2, b2, w3, b3 = params

    def layer(h, w, b):
        y = jnp.dot(h.astype(matmul_dtype), w.astype(matmul_dtype),
                    preferred_element_type=jnp.float32)
        return jnp.maximum(y + b, 0.0)

    h = layer(x, w1, b1)
    h = layer(h, w2, b2)
    out = layer(h, w3, b3)
    mu = out[:, :action_dim]
    log_sigma = jnp.clip(out[:, action_dim:2 * action_dim],
                         MIN_LOG_STD, MAX_LOG_STD)
    return mu, log_sigma


if __name__ == "__main__":
    # Small, shape-consistent example: batch=8, input_dim=16, hidden=[32, 32],
    # action_dim=4 (network output width = 2*action_dim = 8).
    batch = 8
    input_dim = 16
    hidden_sizes = [32, 32]
    action_dim = 4

    key = jax.random.PRNGKey(0)
    key, kx = jax.random.split(key)
    x = jax.random.normal(kx, (batch, input_dim), dtype=jnp.float32)

    params = init_actor_params(key, input_dim, hidden_sizes, action_dim)
    padded_params = pad_actor_params(params, action_dim)

    mu, log_sigma = actor_forward(x, padded_params, action_dim)
    jax.block_until_ready((mu, log_sigma))

    assert mu.shape == (batch, action_dim)
    assert log_sigma.shape == (batch, action_dim)

    # Tight check against a bf16-matmul / f32-accumulate reference (matches the
    # kernel's MXU numerics) ...
    mu_bf, ls_bf = actor_forward_ref(x, params, action_dim,
                                     matmul_dtype=jnp.bfloat16)
    assert jnp.allclose(mu, mu_bf, atol=2e-3, rtol=2e-3)
    assert jnp.allclose(log_sigma, ls_bf, atol=2e-3, rtol=2e-3)
    # ... and a loose sanity check against the pure-f32 reference.
    mu_f32, ls_f32 = actor_forward_ref(x, params, action_dim)
    assert jnp.allclose(mu, mu_f32, atol=5e-2, rtol=5e-2)
    assert jnp.allclose(log_sigma, ls_f32, atol=5e-2, rtol=5e-2)

    # TODO(synk): stochastic heads (random_action / TanhNormal rsample & log_prob)
    # are sampling utilities outside forward() and are not implemented in-kernel.

    print("KERNEL_OK")
</pallas_src>

<mosaic_0001>
module attributes {stable_mosaic.version = 11 : i64} {
  func.func @actor_kernel(%arg0: i32, %arg1: memref<8x16xf32, #tpu.memory_space<vmem>>, %arg2: memref<16x128xbf16, #tpu.memory_space<vmem>>, %arg3: memref<1x128xf32, #tpu.memory_space<vmem>>, %arg4: memref<128x128xbf16, #tpu.memory_space<vmem>>, %arg5: memref<1x128xf32, #tpu.memory_space<vmem>>, %arg6: memref<128x128xbf16, #tpu.memory_space<vmem>>, %arg7: memref<1x128xf32, #tpu.memory_space<vmem>>, %arg8: memref<1x128xf32, #tpu.memory_space<vmem>>, %arg9: memref<8x128xf32, #tpu.memory_space<vmem>>) attributes {dimension_semantics = [#tpu.dimension_semantics<parallel>], iteration_bounds = array<i64: 1>, scalar_prefetch = 0 : i64, scratch_operands = 0 : i64, tpu.core_type = #tpu.core_type<tc>, window_params = [{transform_indices = @transform_0, window_bounds = array<i64: 8, 16>}, {pipeline_mode = #tpu.pipeline_mode<synchronous>, transform_indices = @transform_1, window_bounds = array<i64: 16, 128>}, {pipeline_mode = #tpu.pipeline_mode<synchronous>, transform_indices = @transform_2, window_bounds = array<i64: 1, 128>}, {pipeline_mode = #tpu.pipeline_mode<synchronous>, transform_indices = @transform_3, window_bounds = array<i64: 128, 128>}, {pipeline_mode = #tpu.pipeline_mode<synchronous>, transform_indices = @transform_4, window_bounds = array<i64: 1, 128>}, {pipeline_mode = #tpu.pipeline_mode<synchronous>, transform_indices = @transform_5, window_bounds = array<i64: 128, 128>}, {pipeline_mode = #tpu.pipeline_mode<synchronous>, transform_indices = @transform_6, window_bounds = array<i64: 1, 128>}, {pipeline_mode = #tpu.pipeline_mode<synchronous>, transform_indices = @transform_7, window_bounds = array<i64: 1, 128>}, {transform_indices = @transform_8, window_bounds = array<i64: 8, 128>}]} {
    %c0 = arith.constant 0 : index
    %c0_0 = arith.constant 0 : index
    %0 = vector.load %arg1[%c0, %c0_0] : memref<8x16xf32, #tpu.memory_space<vmem>>, vector<8x16xf32>
    %1 = arith.truncf %0 : vector<8x16xf32> to vector<8x16xbf16>
    %c0_1 = arith.constant 0 : index
    %c0_2 = arith.constant 0 : index
    %2 = vector.load %arg2[%c0_1, %c0_2] : memref<16x128xbf16, #tpu.memory_space<vmem>>, vector<16x128xbf16>
    %cst = arith.constant dense<0.000000e+00> : vector<8x128xf32>
    %3 = tpu.matmul %1, %2, %cst {dimension_numbers = #tpu.dot_dimension_numbers<[1], [0], [0], [1], [0, 0, 1, 1], [], []>} : vector<8x16xbf16>, vector<16x128xbf16>, vector<8x128xf32> -> vector<8x128xf32>
    %c0_3 = arith.constant 0 : index
    %c0_4 = arith.constant 0 : index
    %4 = vector.load %arg3[%c0_3, %c0_4] : memref<1x128xf32, #tpu.memory_space<vmem>>, vector<1x128xf32>
    %5 = vector.broadcast %4 : vector<1x128xf32> to vector<8x128xf32>
    %6 = arith.addf %3, %5 : vector<8x128xf32>
    %cst_5 = arith.constant 0.000000e+00 : f32
    %7 = vector.broadcast %cst_5 : f32 to vector<8x128xf32>
    %8 = arith.maximumf %6, %7 : vector<8x128xf32>
    %9 = arith.truncf %8 : vector<8x128xf32> to vector<8x128xbf16>
    %c0_6 = arith.constant 0 : index
    %c0_7 = arith.constant 0 : index
    %10 = vector.load %arg4[%c0_6, %c0_7] : memref<128x128xbf16, #tpu.memory_space<vmem>>, vector<128x128xbf16>
    %cst_8 = arith.constant dense<0.000000e+00> : vector<8x128xf32>
    %11 = tpu.matmul %9, %10, %cst_8 {dimension_numbers = #tpu.dot_dimension_numbers<[1], [0], [0], [1], [0, 0, 1, 1], [], []>} : vector<8x128xbf16>, vector<128x128xbf16>, vector<8x128xf32> -> vector<8x128xf32>
    %c0_9 = arith.constant 0 : index
    %c0_10 = arith.constant 0 : index
    %12 = vector.load %arg5[%c0_9, %c0_10] : memref<1x128xf32, #tpu.memory_space<vmem>>, vector<1x128xf32>
    %13 = vector.broadcast %12 : vector<1x128xf32> to vector<8x128xf32>
    %14 = arith.addf %11, %13 : vector<8x128xf32>
    %cst_11 = arith.constant 0.000000e+00 : f32
    %15 = vector.broadcast %cst_11 : f32 to vector<8x128xf32>
    %16 = arith.maximumf %14, %15 : vector<8x128xf32>
    %17 = arith.truncf %16 : vector<8x128xf32> to vector<8x128xbf16>
    %c0_12 = arith.constant 0 : index
    %c0_13 = arith.constant 0 : index
    %18 = vector.load %arg6[%c0_12, %c0_13] : memref<128x128xbf16, #tpu.memory_space<vmem>>, vector<128x128xbf16>
    %cst_14 = arith.constant dense<0.000000e+00> : vector<8x128xf32>
    %19 = tpu.matmul %17, %18, %cst_14 {dimension_numbers = #tpu.dot_dimension_numbers<[1], [0], [0], [1], [0, 0, 1, 1], [], []>} : vector<8x128xbf16>, vector<128x128xbf16>, vector<8x128xf32> -> vector<8x128xf32>
    %c0_15 = arith.constant 0 : index
    %c0_16 = arith.constant 0 : index
    %20 = vector.load %arg7[%c0_15, %c0_16] : memref<1x128xf32, #tpu.memory_space<vmem>>, vector<1x128xf32>
    %21 = vector.broadcast %20 : vector<1x128xf32> to vector<8x128xf32>
    %22 = arith.addf %19, %21 : vector<8x128xf32>
    %cst_17 = arith.constant 0.000000e+00 : f32
    %23 = vector.broadcast %cst_17 : f32 to vector<8x128xf32>
    %24 = arith.maximumf %22, %23 : vector<8x128xf32>
    %c0_18 = arith.constant 0 : index
    %c0_19 = arith.constant 0 : index
    %25 = vector.load %arg8[%c0_18, %c0_19] : memref<1x128xf32, #tpu.memory_space<vmem>>, vector<1x128xf32>
    %26 = vector.broadcast %25 : vector<1x128xf32> to vector<8x128xf32>
    %27 = arith.minimumf %24, %26 : vector<8x128xf32>
    %c0_20 = arith.constant 0 : index
    %c0_21 = arith.constant 0 : index
    %28 = vector.load %arg9[%c0_20, %c0_21] : memref<8x128xf32, #tpu.memory_space<vmem>>, vector<8x128xf32>
    tpu.vector_store %arg9[%c0_20, %c0_21], %27 {strides = array<i32>} : memref<8x128xf32, #tpu.memory_space<vmem>>, vector<8x128xf32>,
    return
  }
  func.func @transform_0(%arg0: i32) -> (i32, i32) {
    %c0_i32 = arith.constant 0 : i32
    %c0_i32_0 = arith.constant 0 : i32
    return %arg0, %c0_i32 : i32, i32
  }
  func.func @transform_1(%arg0: i32) -> (i32, i32) {
    %c0_i32 = arith.constant 0 : i32
    %c0_i32_0 = arith.constant 0 : i32
    %c0_i32_1 = arith.constant 0 : i32
    return %c0_i32, %c0_i32_0 : i32, i32
  }
  func.func @transform_2(%arg0: i32) -> (i32, i32) {
    %c0_i32 = arith.constant 0 : i32
    %c0_i32_0 = arith.constant 0 : i32
    %c0_i32_1 = arith.constant 0 : i32
    return %c0_i32, %c0_i32_0 : i32, i32
  }
  func.func @transform_3(%arg0: i32) -> (i32, i32) {
    %c0_i32 = arith.constant 0 : i32
    %c0_i32_0 = arith.constant 0 : i32
    %c0_i32_1 = arith.constant 0 : i32
    return %c0_i32, %c0_i32_0 : i32, i32
  }
  func.func @transform_4(%arg0: i32) -> (i32, i32) {
    %c0_i32 = arith.constant 0 : i32
    %c0_i32_0 = arith.constant 0 : i32
    %c0_i32_1 = arith.constant 0 : i32
    return %c0_i32, %c0_i32_0 : i32, i32
  }
  func.func @transform_5(%arg0: i32) -> (i32, i32) {
    %c0_i32 = arith.constant 0 : i32
    %c0_i32_0 = arith.constant 0 : i32
    %c0_i32_1 = arith.constant 0 : i32
    return %c0_i32, %c0_i32_0 : i32, i32
  }
  func.func @transform_6(%arg0: i32) -> (i32, i32) {
    %c0_i32 = arith.constant 0 : i32
    %c0_i32_0 = arith.constant 0 : i32
    %c0_i32_1 = arith.constant 0 : i32
    return %c0_i32, %c0_i32_0 : i32, i32
  }
  func.func @transform_7(%arg0: i32) -> (i32, i32) {
    %c0_i32 = arith.constant 0 : i32
    %c0_i32_0 = arith.constant 0 : i32
    %c0_i32_1 = arith.constant 0 : i32
    return %c0_i32, %c0_i32_0 : i32, i32
  }
  func.func @transform_8(%arg0: i32) -> (i32, i32) {
    %c0_i32 = arith.constant 0 : i32
    %c0_i32_0 = arith.constant 0 : i32
    return %arg0, %c0_i32 : i32, i32
  }
}

</mosaic_0001>

<bundles_post_ra>
// kernel: actor_forward.1
= control target key start
LH: loop header
LB: loop body
LE: loop exit
PB: predicated region body
PF: predicated region fallthrough
CT: control target
= control target key end

     0   :  { %13 = vsyncpa [#allocation3], 0  ;;  %s578_s0 = inlined_call_operand.hbm [shape: f32[8,16], index: 0, kind: input, shape index: {}]   ;;  %s579_s1 = inlined_call_operand.hbm [shape: bf16[16,128], index: 1, kind: input, shape index: {}]   ;;  %s580_s2 = inlined_call_operand.vmem [shape: f32[1,128], index: 2, kind: input, shape index: {}]   ;;  %s581_s3 = inlined_call_operand.hbm [shape: bf16[128,128], index: 3, kind: input, shape index: {}]   ;;  %s582_s4 = inlined_call_operand.vmem [shape: f32[1,128], index: 4, kind: input, shape index: {}]   ;;  %s583_s5 = inlined_call_operand.hbm [shape: bf16[128,128], index: 5, kind: input, shape index: {}]   ;;  %s584_s6 = inlined_call_operand.vmem [shape: f32[1,128], index: 6, kind: input, shape index: {}]   ;;  %s585_s7 = inlined_call_operand.vmem [shape: f32[1,128], index: 7, kind: input, shape index: {}]   ;;  %s586_s8 = inlined_call_operand.vmem [shape: f32[8,128], index: 8, kind: output, shape index: {}]  }
   0x1   :  { %14 = vsyncpa [#allocation5], 0  ;;  %s31_s29 = sshll.u32 %s579_s1, 4  ;;  %s32_s29 = int_to_ptr.hbm [resolvable:$true] %s31_s29 }
   0x2   :  { %15 = vsyncpa [#allocation8], 0  ;;  %s500_s30 = smov [#allocation4]   ;;  %s21_s12 = sshll.u32 %s578_s0, 4  ;;  %s22_s12 = int_to_ptr.hbm [resolvable:$true] %s21_s12 }
   0x3   :  { %s33_s9 = sshll.u32 %s500_s30, 4  ;;  %s501_s13 = smov 64   ;;  %s34_s9 = int_to_ptr.vmem [resolvable:$true] %s33_s9 }
   0x4   :  { %s502_s14 = smov 4   ;;  %s503_s15 = smov [#allocation2]  }
   0x5   :  { %39 = dma.hbm_to_vmem [thread:$0]  %s32_s29, 128, %s34_s9, [#allocation5], %s501_s13, %s501_s13, %s502_s14  }
   0x6   :  { %s23_s16 = sshll.u32 %s503_s15, 4  ;;  %s46_s19 = sshll.u32 %s581_s3, 4  ;;  %s24_s16 = int_to_ptr.vmem [resolvable:$true] %s23_s16  ;;  %s47_s19 = int_to_ptr.hbm [resolvable:$true] %s46_s19 }
   0x7   :  { %26 = dma.hbm_to_vmem [thread:$0]  %s22_s12, 128, %s24_s16, [#allocation3]  }
   0x8   :  { %s61_s21 = sshll.u32 %s583_s5, 4  ;;  %s504_s22 = smov [#allocation6]   ;;  %s62_s21 = int_to_ptr.hbm [resolvable:$true] %s61_s21 }
   0x9   :  { %s48_s23 = sshll.u32 %s504_s22, 4  ;;  %s505_s0 = smov [#allocation7]   ;;  %s49_s23 = int_to_ptr.vmem [resolvable:$true] %s48_s23 }
   0xa   :  { %54 = dma.hbm_to_vmem [thread:$0]  %s47_s19, 1024, %s49_s23, [#allocation5], %s501_s13, %s501_s13, %s502_s14  }
   0xb   :  { %s63_s24 = sshll.u32 %s505_s0, 4  ;;  %s64_s24 = int_to_ptr.vmem [resolvable:$true] %s63_s24 }
   0xc   :  { %69 = dma.hbm_to_vmem [thread:$0]  %s62_s21, 1024, %s64_s24, [#allocation8], %s501_s13, %s501_s13, %s502_s14  }
   0xd   :  { %494 = dma.done.wait [#allocation3], 128  }
   0xe   :  { %495 = vsyncadd [#allocation3], 4294967168 }
   0xf   :  { %496 = dma.done.wait [#allocation5], 1152  }
  0x10   :  { %497 = vsyncadd [#allocation5], 4294966144 }
  0x11   :  { %498 = dma.done.wait [#allocation8], 1024  }
  0x12   :  { %499 = vsyncadd [#allocation8], 4294966272  ;;  %v371_v0 = vld [vmem:[#allocation4] sm:$0xff]  ;;  %v91_v1 = vld [vmem:[#allocation2] sm:$0xff]  ;;  %vm105_vm0 = vcmask 130048  }
  0x13   :  { %v379_v2 = vld [vmem:[#allocation6 + $0x38] sm:$0xff]  ;;  %v92_v3 = vpack.c.bf16 %v91_v1, %v91_v1  ;;  %116 = vmatpush.bf16.msra.mxu0 %v371_v0  ;;  %v378_v4 = vld [vmem:[#allocation6 + $0x30] sm:$0xff]  ;;  %v377_v5 = vld [vmem:[#allocation6 + $0x28] sm:$0xff] }
  0x14   :  { %192 = vmatpush.bf16.msra.mxu1 %v379_v2  ;;  %v376_v6 = vld [vmem:[#allocation6 + $0x20] sm:$0xff]  ;;  %v375_v7 = vld [vmem:[#allocation6 + $0x18] sm:$0xff]  ;;  %v374_v8 = vld [vmem:[#allocation6 + $0x10] sm:$0xff] }
  0x15   :  { %v373_v9 = vld [vmem:[#allocation6 + $0x8] sm:$0xff]  ;;  %v372_v10 = vld [vmem:[#allocation6] sm:$0xff]  ;;  %v387_v11 = vld [vmem:[#allocation7 + $0x38] sm:$0xff] }
  0x16   :  { %306 = vmatmul.msk.bf16.vlgmr.msra.gmra.mxu0 %vm105_vm0, %v92_v3  ;;  %275 = vmatpush.bf16.msra.mxu2 %v387_v11  ;;  %v386_v12 = vld [vmem:[#allocation7 + $0x30] sm:$0xff]  ;;  %v385_v13 = vld [vmem:[#allocation7 + $0x28] sm:$0xff]  ;;  %v384_v14 = vld [vmem:[#allocation7 + $0x20] sm:$0xff] }
  0x17   :  { %v383_v15 = vld [vmem:[#allocation7 + $0x18] sm:$0xff]  ;;  %v382_v16 = vld [vmem:[#allocation7 + $0x10] sm:$0xff]  ;;  %v381_v23 = vld [vmem:[#allocation7 + $0x8] sm:$0xff] }
  0x18   :  { %193 = vmatpush.bf16.msra.mxu1 %v378_v4  ;;  %v394_v17 = vld [vmem:[%s580_s2] ss:$0 sm:$0xff]  ;;  %v380_v24 = vld [vmem:[#allocation7] sm:$0xff] }
  0x19   :  { %v395_v25 = vld [vmem:[%s582_s4] ss:$0 sm:$0xff] }
  0x1a   :  { %276 = vmatpush.bf16.msra.mxu2 %v386_v12  ;;  %v396_v31 = vld [vmem:[%s584_s6] ss:$0 sm:$0xff] }
  0x1b   :  { %v397_v34 = vld [vmem:[%s585_s7] ss:$0 sm:$0xff] }
  0x1c   :  { %194 = vmatpush.bf16.msra.mxu1 %v377_v5 }
  0x1e   :  { %277 = vmatpush.bf16.msra.mxu2 %v385_v13 }
  0x20   :  { %195 = vmatpush.bf16.msra.mxu1 %v376_v6 }
  0x22   :  { %278 = vmatpush.bf16.msra.mxu2 %v384_v14 }
  0x24   :  { %196 = vmatpush.bf16.msra.mxu1 %v375_v7 }
  0x26   :  { %279 = vmatpush.bf16.msra.mxu2 %v383_v15 }
  0x28   :  { %197 = vmatpush.bf16.msra.mxu1 %v374_v8 }
  0x2a   :  { %280 = vmatpush.bf16.msra.mxu2 %v382_v16 }
  0x2c   :  { %198 = vmatpush.bf16.msra.mxu1 %v373_v9 }
  0x2e   :  { %281 = vmatpush.bf16.msra.mxu2 %v381_v23 }
  0x30   :  { %199 = vmatpush.bf16.msra.mxu1 %v372_v10 }
  0x32   :  { %282 = vmatpush.bf16.msra.mxu2 %v380_v24 }
  0x93   :  { %v118_v18 = vpop.f32.mrf.mxu0 }
  0x94   :  { %v119_v19 = vadd.f32 %v394_v17, %v118_v18 }
  0x96   :  { %v122_v20 = vmax.f32 %v119_v19, 0.0 }
  0x98   :  { %v123_v21 = vpack.c.bf16 %v122_v20, %v122_v20 }
  0x9a   :  { %200 = vmatmul.bf16.vlgmr.msra.gmra.mxu1 %v123_v21 }
  0x9b   :  { %v120_v22 = vpop.f32.mrf.mxu0 }
 0x117   :  { %v201_v26 = vpop.f32.mrf.mxu1 }
 0x118   :  { %v202_v27 = vadd.f32 %v395_v25, %v201_v26 }
 0x11a   :  { %v205_v28 = vmax.f32 %v202_v27, 0.0 }
 0x11c   :  { %v206_v29 = vpack.c.bf16 %v205_v28, %v205_v28 }
 0x11e   :  { %283 = vmatmul.bf16.vlgmr.msra.gmra.mxu2 %v206_v29 }
 0x11f   :  { %v203_v30 = vpop.f32.mrf.mxu1 }
 0x1a1   :  { %v284_v32 = vpop.f32.mrf.mxu2 }
 0x1a2   :  { %v285_v33 = vadd.f32 %v396_v31, %v284_v32 }
 0x1a4   :  { %v288_v35 = vmax.f32 %v285_v33, 0.0 }
 0x1a6   :  { %v293_v36 = vmin.f32 %v288_v35, %v397_v34 }
 0x1a8   :  { %294 = vst [vmem:[%s586_s8] sm:$0xff] %v293_v36 }
 0x1a9   :  { %v286_v37 = vpop.f32.mrf.mxu2 }
 0x1aa   :  { %299 = vsyncpa [#allocation3], 1 }
 0x1ab   :  { %300 = vsyncpa [#allocation5], 1 }
 0x1ac   :  { %301 = vsyncpa [#allocation8], 1 }

</bundles_post_ra>
